<compile_context>
chip_gen: v7x
topology: tpu7x:2x2x1
jax: 0.10.0
libtpu: 0.0.40
codegen_flags: <defaults>
</compile_context>

<pallas_src>
import numpy as np
import jax
import jax.numpy as jnp
from jax.experimental import pallas as pl
from jax.experimental.pallas import tpu as pltpu

# --------------------------- configuration ----------------------------------
BATCH    = 2
C_IN     = 3               # image channels
IMG      = 16              # input image spatial size
PATCH    = 2               # stand-in "resnet": patchify conv kernel == stride
POOL     = IMG // PATCH    # pool_size == feature-map spatial size (8)
HW       = POOL * POOL     # 64 feature-map positions
FEAT     = 32              # fc_feat_size == att_feat_size
ATT_SIZE = 8               # region boxes per image
NREG     = ATT_SIZE + 1    # + 1 full-map "region" per image -> fc_feats row
KTAP     = PATCH * C_IN    # 6: (kw, c) flattened per horizontal tap


# --------------------------- fused Pallas kernel -----------------------------
def _fused_kernel(img_ref, w_ref, b_ref, mask_ref, fc_ref, att_ref):
    # img_ref : (POOL, PATCH, POOL, KTAP)   one image, tap-friendly NHWC layout
    #           index meaning [oh, kh, ow, kw*C+c]
    # w_ref   : (PATCH, KTAP, FEAT)         patchify-conv weight, row-tap major
    # b_ref   : (1, FEAT)                   conv bias
    # mask_ref: (1, NREG, HW)               membership mask, 1/area pre-folded;
    #                                       rows 0..ATT_SIZE-1 = regions,
    #                                       row  ATT_SIZE      = full map (fc)
    # fc_ref  : (1, 1, FEAT)                full-map mean      (fc_feats)
    # att_ref : (1, ATT_SIZE, FEAT)         per-region means   (att_feats)

    img = img_ref[...]                                       # (8, 2, 8, 6)

    # ---- stand-in "resnet": patchify conv (k=2, s=2) + bias + ReLU ---------
    # TODO(synk): the original wraps an arbitrary pretrained torchvision
    # ResNet; here it is a deterministic patchify-conv + ReLU stand-in.
    acc = jnp.zeros((HW, FEAT), dtype=jnp.float32)
    for kh in range(PATCH):                                  # static, unrolled
        # leading-dim index + leading-dim-collapse reshape (layout no-op)
        patches = img[:, kh, :, :].reshape(HW, KTAP)         # (64, 6)
        acc = acc + jnp.dot(patches, w_ref[kh],
                            preferred_element_type=jnp.float32)
    feat = jnp.maximum(acc + b_ref[...], 0.0)                # (64, 32) f32

    # ---- fc + att pooling: one mask @ feat dot (1/area folded into mask) ---
    pooled = jnp.dot(mask_ref[0], feat,
                     preferred_element_type=jnp.float32)     # (NREG, 32)
    att_ref[0] = pooled[:ATT_SIZE, :]                        # sublane-aligned
    fc_ref[0]  = pooled[ATT_SIZE:, :]                        # sublane-aligned


_COST = pl.CostEstimate(
    flops=BATCH * (2 * HW * PATCH * KTAP * FEAT + 2 * NREG * HW * FEAT),
    transcendentals=0,
    bytes_accessed=4 * (BATCH * IMG * IMG * C_IN + PATCH * KTAP * FEAT + FEAT
                        + BATCH * NREG * HW + BATCH * FEAT
                        + BATCH * ATT_SIZE * FEAT),
)


# --------------------------- JAX-side wrapper --------------------------------
@jax.jit
def forward(images_nhwc, w, bias, mask):
    """images_nhwc (B, IMG, IMG, C) f32, mask (B, NREG, HW) f32 -> (fc, att)."""
    # Pure row-major reshape (free bitcast, no transpose):
    # (B, H, W, C) -> (B*POOL, PATCH, POOL, PATCH*C) == [b*POOL+oh, kh, ow, kw*C+c]
    img_taps = images_nhwc.reshape(BATCH * POOL, PATCH, POOL, KTAP)

    fc3, att = pl.pallas_call(
        _fused_kernel,
        out_shape=(
            jax.ShapeDtypeStruct((BATCH, 1, FEAT), jnp.float32),
            jax.ShapeDtypeStruct((BATCH, ATT_SIZE, FEAT), jnp.float32),
        ),
        grid=(BATCH,),
        in_specs=[
            pl.BlockSpec((POOL, PATCH, POOL, KTAP), lambda b: (b, 0, 0, 0)),
            pl.BlockSpec((PATCH, KTAP, FEAT), lambda b: (0, 0, 0)),
            pl.BlockSpec((1, FEAT), lambda b: (0, 0)),
            pl.BlockSpec((1, NREG, HW), lambda b: (b, 0, 0)),
        ],
        out_specs=(
            pl.BlockSpec((1, 1, FEAT), lambda b: (b, 0, 0)),
            pl.BlockSpec((1, ATT_SIZE, FEAT), lambda b: (b, 0, 0)),
        ),
        compiler_params=pltpu.CompilerParams(
            dimension_semantics=("parallel",)),
        cost_estimate=_COST,
    )(img_taps, w, bias, mask)

    return fc3.reshape(BATCH, FEAT), att       # reshape is a free bitcast


# ----------------- host-side box preprocessing (mirrors the PyTorch code) ----
def prepare_boxes_and_mask(boxes01):
    """boxes01: (B, ATT_SIZE, 4) float in [0,1] as [x1, y1, x2, y2].
       Scale by pool_size, round, widen degenerate boxes (exactly as the
       original module), then bake the per-region mean into a (B, NREG, HW)
       f32 mask with 1/area folded in (last row per image = full-map mean)."""
    rb = np.round(boxes01 * POOL).astype(np.int64)
    x1, y1, x2, y2 = rb[..., 0], rb[..., 1], rb[..., 2], rb[..., 3]

    eqx = x1 == x2
    growx = eqx & (x2 < POOL)
    shrinkx = eqx & ~growx & (x1 > 0)
    x2 = np.where(growx, x2 + 1, x2)
    x1 = np.where(shrinkx, x1 - 1, x1)

    eqy = y1 == y2
    growy = eqy & (y2 < POOL)
    shrinky = eqy & ~growy & (y1 > 0)
    y2 = np.where(growy, y2 + 1, y2)
    y1 = np.where(shrinky, y1 - 1, y1)

    xs = np.tile(np.arange(POOL), POOL)        # p % POOL  (x / width)
    ys = np.repeat(np.arange(POOL), POOL)      # p // POOL (y / height)
    inside = ((xs[None, None, :] >= x1[..., None])
              & (xs[None, None, :] < x2[..., None])
              & (ys[None, None, :] >= y1[..., None])
              & (ys[None, None, :] < y2[..., None]))       # (B, ATT, HW)
    area = np.maximum((x2 - x1) * (y2 - y1), 1).astype(np.float32)
    att_mask = inside.astype(np.float32) / area[..., None]  # 1/area folded in
    full = np.full((boxes01.shape[0], 1, HW), 1.0 / HW, np.float32)
    mask = np.concatenate([att_mask, full], axis=1)         # (B, NREG, HW)

    adj = np.stack([x1, y1, x2, y2], axis=-1).astype(np.int64)
    return mask.astype(np.float32), adj


# --------------------------- main --------------------------------------------
if __name__ == "__main__":
    key = jax.random.PRNGKey(0)
    k_img, k_box, k_w, k_b = jax.random.split(key, 4)

    # NHWC images (review: feed NHWC so no pre-kernel transpose is needed)
    images = jax.random.normal(k_img, (BATCH, IMG, IMG, C_IN), dtype=jnp.float32)

    # normalized boxes in [0,1]: ensure x1<=x2, y1<=y2
    u = np.asarray(jax.random.uniform(k_box, (BATCH, ATT_SIZE, 4)))
    boxes01 = np.stack(
        [np.minimum(u[..., 0], u[..., 2]), np.minimum(u[..., 1], u[..., 3]),
         np.maximum(u[..., 0], u[..., 2]), np.maximum(u[..., 1], u[..., 3])],
        axis=-1,
    )

    # deterministic patchify-conv parameters, row-tap-major: w[kh, kw*C+c, f]
    w = jax.random.normal(k_w, (PATCH, KTAP, FEAT), dtype=jnp.float32) * 0.1
    bias = jax.random.normal(k_b, (1, FEAT), dtype=jnp.float32) * 0.01

    mask_np, adj = prepare_boxes_and_mask(boxes01)
    fc_feats, att_feats = forward(images, w, bias, jnp.asarray(mask_np))
    jax.block_until_ready((fc_feats, att_feats))

    # ------- host-side reference check of the full forward semantics --------
    imgs_np = np.asarray(images)                   # (B, 16, 16, 3)
    w_np = np.asarray(w)                           # (2, 6, 32)
    b_np = np.asarray(bias)                        # (1, 32)
    feat_ref = np.zeros((BATCH, POOL, POOL, FEAT), np.float32)
    for kh in range(PATCH):
        for kw in range(PATCH):
            tap = imgs_np[:, kh::PATCH, kw::PATCH, :]          # (B, 8, 8, 3)
            wt = w_np[kh, kw * C_IN:(kw + 1) * C_IN, :]        # (3, 32)
            feat_ref += tap @ wt
    feat_ref = np.maximum(feat_ref + b_np.reshape(1, 1, 1, FEAT), 0.0)

    fc_ref = feat_ref.reshape(BATCH, HW, FEAT).mean(axis=1)
    att_ref = np.zeros((BATCH, ATT_SIZE, FEAT), np.float32)
    for i in range(BATCH):
        for j in range(ATT_SIZE):
            bx1, by1, bx2, by2 = adj[i, j]
            att_ref[i, j] = feat_ref[i, by1:by2, bx1:bx2, :].mean(axis=(0, 1))

    # tolerance leaves headroom for MXU f32 matmul pass behaviour
    assert np.allclose(np.asarray(fc_feats), fc_ref, atol=5e-3, rtol=5e-3)
    assert np.allclose(np.asarray(att_feats), att_ref, atol=5e-3, rtol=5e-3)

    assert fc_feats.shape == (BATCH, FEAT)
    assert att_feats.shape == (BATCH, ATT_SIZE, FEAT)
    print("KERNEL_OK")
</pallas_src>

<mosaic_0001>
module attributes {stable_mosaic.version = 11 : i64} {
  func.func @_fused_kernel(%arg0: i32, %arg1: memref<8x2x8x6xf32, #tpu.memory_space<vmem>>, %arg2: memref<2x6x32xf32, #tpu.memory_space<vmem>>, %arg3: memref<1x32xf32, #tpu.memory_space<vmem>>, %arg4: memref<1x9x64xf32, #tpu.memory_space<vmem>>, %arg5: memref<1x1x32xf32, #tpu.memory_space<vmem>>, %arg6: memref<1x8x32xf32, #tpu.memory_space<vmem>>) attributes {dimension_semantics = [#tpu.dimension_semantics<parallel>], iteration_bounds = array<i64: 2>, scalar_prefetch = 0 : i64, scratch_operands = 0 : i64, tpu.core_type = #tpu.core_type<tc>, window_params = [{transform_indices = @transform_0, window_bounds = array<i64: 8, 2, 8, 6>}, {pipeline_mode = #tpu.pipeline_mode<synchronous>, transform_indices = @transform_1, window_bounds = array<i64: 2, 6, 32>}, {pipeline_mode = #tpu.pipeline_mode<synchronous>, transform_indices = @transform_2, window_bounds = array<i64: 1, 32>}, {transform_indices = @transform_3, window_bounds = array<i64: 1, 9, 64>}, {transform_indices = @transform_4, window_bounds = array<i64: 1, 1, 32>}, {transform_indices = @transform_5, window_bounds = array<i64: 1, 8, 32>}]} {
    %c0 = arith.constant 0 : index
    %c0_0 = arith.constant 0 : index
    %c0_1 = arith.constant 0 : index
    %c0_2 = arith.constant 0 : index
    %0 = vector.load %arg1[%c0, %c0_0, %c0_1, %c0_2] : memref<8x2x8x6xf32, #tpu.memory_space<vmem>>, vector<8x2x8x6xf32>
    %cst = arith.constant 0.000000e+00 : f32
    %1 = vector.broadcast %cst : f32 to vector<64x32xf32>
    %2 = vector.extract_strided_slice %0 {offsets = [0, 0, 0, 0], sizes = [8, 1, 8, 6], strides = [1, 1, 1, 1]} : vector<8x2x8x6xf32> to vector<8x1x8x6xf32>
    %3 = vector.shape_cast %2 : vector<8x1x8x6xf32> to vector<8x8x6xf32>
    %4 = vector.shape_cast %3 : vector<8x8x6xf32> to vector<64x6xf32>
    %c0_3 = arith.constant 0 : index
    %c0_4 = arith.constant 0 : index
    %c0_5 = arith.constant 0 : index
    %5 = vector.load %arg2[%c0_3, %c0_4, %c0_5] : memref<2x6x32xf32, #tpu.memory_space<vmem>>, vector<1x6x32xf32>
    %6 = vector.shape_cast %5 : vector<1x6x32xf32> to vector<6x32xf32>
    %cst_6 = arith.constant dense<0.000000e+00> : vector<64x32xf32>
    %7 = tpu.matmul %4, %6, %cst_6 {dimension_numbers = #tpu.dot_dimension_numbers<[1], [0], [0], [1], [0, 0, 1, 1], [], []>} : vector<64x6xf32>, vector<6x32xf32>, vector<64x32xf32> -> vector<64x32xf32>
    %8 = arith.addf %1, %7 : vector<64x32xf32>
    %9 = vector.extract_strided_slice %0 {offsets = [0, 1, 0, 0], sizes = [8, 1, 8, 6], strides = [1, 1, 1, 1]} : vector<8x2x8x6xf32> to vector<8x1x8x6xf32>
    %10 = vector.shape_cast %9 : vector<8x1x8x6xf32> to vector<8x8x6xf32>
    %11 = vector.shape_cast %10 : vector<8x8x6xf32> to vector<64x6xf32>
    %c1 = arith.constant 1 : index
    %c0_7 = arith.constant 0 : index
    %c0_8 = arith.constant 0 : index
    %12 = vector.load %arg2[%c1, %c0_7, %c0_8] : memref<2x6x32xf32, #tpu.memory_space<vmem>>, vector<1x6x32xf32>
    %13 = vector.shape_cast %12 : vector<1x6x32xf32> to vector<6x32xf32>
    %cst_9 = arith.constant dense<0.000000e+00> : vector<64x32xf32>
    %14 = tpu.matmul %11, %13, %cst_9 {dimension_numbers = #tpu.dot_dimension_numbers<[1], [0], [0], [1], [0, 0, 1, 1], [], []>} : vector<64x6xf32>, vector<6x32xf32>, vector<64x32xf32> -> vector<64x32xf32>
    %15 = arith.addf %8, %14 : vector<64x32xf32>
    %c0_10 = arith.constant 0 : index
    %c0_11 = arith.constant 0 : index
    %16 = vector.load %arg3[%c0_10, %c0_11] : memref<1x32xf32, #tpu.memory_space<vmem>>, vector<1x32xf32>
    %17 = vector.broadcast %16 : vector<1x32xf32> to vector<64x32xf32>
    %18 = arith.addf %15, %17 : vector<64x32xf32>
    %cst_12 = arith.constant 0.000000e+00 : f32
    %19 = vector.broadcast %cst_12 : f32 to vector<64x32xf32>
    %20 = arith.maximumf %18, %19 : vector<64x32xf32>
    %c0_13 = arith.constant 0 : index
    %c0_14 = arith.constant 0 : index
    %c0_15 = arith.constant 0 : index
    %21 = vector.load %arg4[%c0_13, %c0_14, %c0_15] : memref<1x9x64xf32, #tpu.memory_space<vmem>>, vector<1x9x64xf32>
    %22 = vector.shape_cast %21 : vector<1x9x64xf32> to vector<9x64xf32>
    %cst_16 = arith.constant dense<0.000000e+00> : vector<9x32xf32>
    %23 = tpu.matmul %22, %20, %cst_16 {dimension_numbers = #tpu.dot_dimension_numbers<[1], [0], [0], [1], [0, 0, 1, 1], [], []>} : vector<9x64xf32>, vector<64x32xf32>, vector<9x32xf32> -> vector<9x32xf32>
    %24 = vector.extract_strided_slice %23 {offsets = [0, 0], sizes = [8, 32], strides = [1, 1]} : vector<9x32xf32> to vector<8x32xf32>
    %c0_17 = arith.constant 0 : index
    %c0_18 = arith.constant 0 : index
    %c0_19 = arith.constant 0 : index
    %25 = vector.load %arg6[%c0_17, %c0_18, %c0_19] : memref<1x8x32xf32, #tpu.memory_space<vmem>>, vector<1x8x32xf32>
    %26 = vector.shape_cast %25 : vector<1x8x32xf32> to vector<8x32xf32>
    %27 = vector.shape_cast %24 : vector<8x32xf32> to vector<1x8x32xf32>
    tpu.vector_store %arg6[%c0_17, %c0_18, %c0_19], %27 {strides = array<i32>} : memref<1x8x32xf32, #tpu.memory_space<vmem>>, vector<1x8x32xf32>,
    %28 = vector.extract_strided_slice %23 {offsets = [8, 0], sizes = [1, 32], strides = [1, 1]} : vector<9x32xf32> to vector<1x32xf32>
    %c0_20 = arith.constant 0 : index
    %c0_21 = arith.constant 0 : index
    %c0_22 = arith.constant 0 : index
    %29 = vector.load %arg5[%c0_20, %c0_21, %c0_22] : memref<1x1x32xf32, #tpu.memory_space<vmem>>, vector<1x1x32xf32>
    %30 = vector.shape_cast %29 : vector<1x1x32xf32> to vector<1x32xf32>
    %31 = vector.shape_cast %28 : vector<1x32xf32> to vector<1x1x32xf32>
    tpu.vector_store %arg5[%c0_20, %c0_21, %c0_22], %31 {strides = array<i32>} : memref<1x1x32xf32, #tpu.memory_space<vmem>>, vector<1x1x32xf32>,
    return
  }
  func.func @transform_0(%arg0: i32) -> (i32, i32, i32, i32) {
    %c0_i32 = arith.constant 0 : i32
    %c0_i32_0 = arith.constant 0 : i32
    %c0_i32_1 = arith.constant 0 : i32
    %c0_i32_2 = arith.constant 0 : i32
    return %arg0, %c0_i32, %c0_i32_0, %c0_i32_1 : i32, i32, i32, i32
  }
  func.func @transform_1(%arg0: i32) -> (i32, i32, i32) {
    %c0_i32 = arith.constant 0 : i32
    %c0_i32_0 = arith.constant 0 : i32
    %c0_i32_1 = arith.constant 0 : i32
    %c0_i32_2 = arith.constant 0 : i32
    return %c0_i32, %c0_i32_0, %c0_i32_1 : i32, i32, i32
  }
  func.func @transform_2(%arg0: i32) -> (i32, i32) {
    %c0_i32 = arith.constant 0 : i32
    %c0_i32_0 = arith.constant 0 : i32
    %c0_i32_1 = arith.constant 0 : i32
    return %c0_i32, %c0_i32_0 : i32, i32
  }
  func.func @transform_3(%arg0: i32) -> (i32, i32, i32) {
    %c0_i32 = arith.constant 0 : i32
    %c0_i32_0 = arith.constant 0 : i32
    %c0_i32_1 = arith.constant 0 : i32
    return %arg0, %c0_i32, %c0_i32_0 : i32, i32, i32
  }
  func.func @transform_4(%arg0: i32) -> (i32, i32, i32) {
    %c0_i32 = arith.constant 0 : i32
    %c0_i32_0 = arith.constant 0 : i32
    %c0_i32_1 = arith.constant 0 : i32
    return %arg0, %c0_i32, %c0_i32_0 : i32, i32, i32
  }
  func.func @transform_5(%arg0: i32) -> (i32, i32, i32) {
    %c0_i32 = arith.constant 0 : i32
    %c0_i32_0 = arith.constant 0 : i32
    %c0_i32_1 = arith.constant 0 : i32
    return %arg0, %c0_i32, %c0_i32_0 : i32, i32, i32
  }
}

</mosaic_0001>

<bundles_post_ra>
// kernel: forward.1
= control target key start
LH: loop header
LB: loop body
LE: loop exit
PB: predicated region body
PF: predicated region fallthrough
CT: control target
= control target key end

     0   :  { %11 = vsyncpa [#allocation3], 0  ;;  %s1264_s0 = inlined_call_operand.vmem [shape: f32[16,2,8,6], index: 0, kind: input, shape index: {}]   ;;  %s1265_s1 = inlined_call_operand.vmem [shape: f32[2,6,32], index: 1, kind: input, shape index: {}]   ;;  %s1266_s2 = inlined_call_operand.vmem [shape: f32[1,32], index: 2, kind: input, shape index: {}]   ;;  %s1267_s3 = inlined_call_operand.vmem [shape: f32[2,9,64], index: 3, kind: input, shape index: {}]   ;;  %s1268_s4 = inlined_call_operand.hbm [shape: f32[2,1,32], index: 4, kind: output, shape index: {0}]   ;;  %s1269_s5 = inlined_call_operand.hbm [shape: f32[2,8,32], index: 5, kind: output, shape index: {1}]  }
   0x1   :  { %13 = vsyncpa [#allocation3 + $0x1], 0 }
   0x2   :  { %14 = vsyncpa [#allocation5], 0 }
   0x3   :  { %16 = vsyncpa [#allocation5 + $0x1], 0  ;;  %s1094_s18 = smov 0   ;;  %s1096_s19 = smov 0  }
   0x4   :  { %s1098_s20 = smov 0   ;;  %s1100_s21 = smov 0  }
   0x5 LB: > { %s1115_s22 = sadd.s32 4294967295, %s1060_s21   ;;  %s784_s23 = sadd.s32 4294967294, %s1060_s21   ;;  %s1060_s21 = sphi %s1100_s21, %s1275_s21   ;;  %s1056_s20 = sphi %s1098_s20, %s1274_s20   ;;  %s1052_s19 = sphi %s1096_s19, %s1273_s19   ;;  %s1048_s18 = sphi %s1094_s18, %s1272_s18  }
   0x6   : > { %s1119_s24 = sadd.s32 1, %s1060_s21   ;;  %s123_s25 = sadd.s32 1, %s1056_s20 }
   0x7   : > { %s120_s26 = ssub.s32 %s1060_s21, %s1119_s24  ;;  %p133_p0 = scmp.ne.s32.totalorder %s1056_s20, %s1052_s19 }
   0x8   : > { %p121_p1 = scmp.eq.s32.totalorder %s120_s26, 0  ;;  %p134_p2 = scmp.eq.s32.totalorder %s1115_s22, 1 }
   0x9   : > { %p139_p3 = scmp.ne.s32.totalorder %s1052_s19, %s1048_s18  ;;  %p140_p4 = scmp.eq.s32.totalorder %s784_s23, 1 }
   0xa   : > { %s1130_s27 = scalar_select %p121_p1, %s1056_s20, %s123_s25  }
   0xb   : > { %p1132_p5 = por %p134_p2, %p133_p0  ;;  %p1136_p6 = por %p140_p4, %p139_p3 }
   0xc   : > { %p787_p7 = scmp.ge.s32.totalorder %s1060_s21, 1  ;;  %p208_p8 = scmp.lt.s32.totalorder %s1060_s21, 3 }
   0xe   : > { %p209_p9 = pnand %p787_p7, %p208_p8 }
   0xf   : > { %v794_v0 = vld [vmem:[%s1265_s1 + $0x8] sm:$0x3f] (!%p209_p9)  ;;  %vm302_vm0 = vcmask (!%p209_p9), 1045504   ;;  %v274_v1 = vld [vmem:[%s1265_s1] sm:$0x3f] (!%p209_p9)  ;;  %s789_s9 = sshll.u32 (!%p209_p9), %s1115_s22, 3 }
  0x10   : > { %212 = sbr.rel (%p209_p9) target bundleno = 515 (0x203), region = 36  ;;  %851 = vmatprep.subr.msk.mxu1 (!%p209_p9), %vm302_vm0, %v794_v0  ;;  %865 = vmatprep.subr.msk.mxu0 (!%p209_p9), %vm302_vm0, %v274_v1  ;;  %p247_p10 = scmp.lt.s32.totalorder (!%p209_p9), %s789_s9, 15  ;;  %vm277_vm1 = vcmask (!%p209_p9), 48128   ;;  %vm568_vm2 = vcmask (!%p209_p9), 523264   ;;  %v813_v21 = vld [vmem:[%s1266_s2] ss:$0 sm:$0xff] (!%p209_p9) }
  0x11   : > { %852 = vmatpush3.msk.msra.mxu1 (!%p209_p9), %vm302_vm0, %v794_v0  ;;  %866 = vmatpush3.msk.msra.mxu0 (!%p209_p9), %vm302_vm0, %v274_v1  ;;  %p253_p11 = scmp.lt.s32.totalorder (!%p209_p9), %s1115_s22, 1  ;;  %s1183_s30 = sand.u32 (!%p209_p9), 1, %s1052_s19   ;;  %vm652_vm3 = vcmask (!%p209_p9), 253952   ;;  %vm650_vm4 = vcmask (!%p209_p9), 261120  }
  0x12   : > { %s788_s6 = sshll.u32 (!%p209_p9), %s1183_s30, 3  ;;  %s817_s7 = sshll.u32 (!%p209_p9), %s1115_s22, 4 }
  0x13   : > { %s238_s8 = scalar_lea.vmem (!%p209_p9), [#allocation2], %s1183_s30  ;;  %s245_s11 = scalar_lea.vmem (!%p209_p9), [#allocation4], %s788_s6 }
  0x14   : > { %s685_s12 = sshll.u32 (!%p209_p9), %s245_s11, 4  ;;  %s1062_s26 = smov (!%p209_p9), [#allocation2]   ;;  %s1201_s12 = int_to_ptr.vmem [resolvable:$true] %s685_s12 }
  0x15   : > { %s970_s6 = sshll.u32 (!%p209_p9), %s1062_s26, 4  ;;  %s971_s6 = int_to_ptr.vmem [resolvable:$false] %s970_s6 }
  0x17   : > { %s1277_s9 = smov (!%p247_p10, %s789_s9), 15 }
  0x18   : > { %s821_s10 = sshll.u32 %s1277_s9, 4  ;;  %s672_s9 = sshll.u32 %s238_s8, 4  ;;  %s1194_s9 = int_to_ptr.vmem [resolvable:$true] %s672_s9 }
  0x19   : > { %s251_s13 = scalar_lea.vmem %s1264_s0, %s821_s10  ;;  %s818_s10 = sshll.u32 %s1115_s22, 7 }
  0x1a   : > { %v259_v2 = vld [vmem:[%s251_s13 + $0x8] sm:$0xff]  ;;  %v258_v3 = vld [vmem:[%s251_s13] sm:$0xff]  ;;  %v261_v4 = vld [vmem:[%s251_s13 + $0x18] sm:$0xff]  ;;  %s254_s14 = scalar_select %p253_p11, %s1115_s22, 1 }
  0x1b   : > { %853 = vmatprep.mubr.msk.f32.mxu1 %vm277_vm1, %v259_v2  ;;  %867 = vmatprep.mubr.msk.f32.mxu0 %vm277_vm1, %v258_v3  ;;  %v260_v5 = vld [vmem:[%s251_s13 + $0x10] sm:$0xff]  ;;  %v263_v6 = vld [vmem:[%s251_s13 + $0x28] sm:$0xff]  ;;  %v262_v7 = vld [vmem:[%s251_s13 + $0x20] sm:$0xff]  ;;  %s1199_s22 = scalar_lea.hbm %s1269_s5, %s818_s10  ;;  %s966_s25 = scalar_lea.vmem %s1194_s9, 16 }
  0x1c   : > { %854 = vmatmul.mubr.msk.f32.vlgmr.msra.gmra.mrb[0].mxu1 %vm277_vm1, %v261_v4  ;;  %868 = vmatmul.mubr.msk.f32.vlgmr.msra.gmra.mrb[0].mxu0 %vm277_vm1, %v260_v5  ;;  %v265_v8 = vld [vmem:[%s251_s13 + $0x38] sm:$0xff]  ;;  %v264_v9 = vld [vmem:[%s251_s13 + $0x30] sm:$0xff]  ;;  %v267_v10 = vld [vmem:[%s251_s13 + $0x48] sm:$0xff]  ;;  %s822_s15 = sshll.u32 %s254_s14, 4  ;;  %p967_p12 = scmp.ne.s32.totalorder %s1194_s9, %s966_s25 }
  0x1d   : > { %856 = vmatprep.mubr.msk.f32.mxu1 %vm277_vm1, %v263_v6  ;;  %870 = vmatprep.mubr.msk.f32.mxu0 %vm277_vm1, %v262_v7  ;;  %v266_v11 = vld [vmem:[%s251_s13 + $0x40] sm:$0xff]  ;;  %v269_v12 = vld [vmem:[%s251_s13 + $0x58] sm:$0xff]  ;;  %v268_v13 = vld [vmem:[%s251_s13 + $0x50] sm:$0xff]  ;;  %s1173_s23 = scalar_lea.vmem %s1267_s3, %s822_s15  ;;  %s1192_s15 = scalar_lea.hbm %s1268_s4, %s817_s7 }
  0x1e   : > { %v271_v14 = vld [vmem:[%s251_s13 + $0x68] sm:$0xff]  ;;  %v270_v15 = vld [vmem:[%s251_s13 + $0x60] sm:$0xff]  ;;  %v273_v16 = vld [vmem:[%s251_s13 + $0x78] sm:$0xff]  ;;  %p968_p13 = pnand %p967_p12, %p1132_p5  ;;  %s972_s7 = scalar_lea.vmem %s971_s6, 32 }
  0x1f   : > { %v272_v17 = vld [vmem:[%s251_s13 + $0x70] sm:$0xff]  ;;  %v566_v18 = vld [vmem:[%s1173_s23] sm:$0xff]  ;;  %v567_v0 = vld [vmem:[%s1173_s23 + $0x8] sm:$0x1]  ;;  %s655_s23 = scalar_lea.sflag [#allocation3], %s1183_s30  ;;  %p973_p1 = scmp.lt.s32.totalorder %s1194_s9, %s971_s6 }
  0x20   : > { %857 = vmatmul.mubr.msk.f32.gmra.mrb[2].mxu1 %vm277_vm1, %v265_v8  ;;  %871 = vmatmul.mubr.msk.f32.gmra.mrb[2].mxu0 %vm277_vm1, %v264_v9  ;;  %p969_p0 = pneg %p968_p13  ;;  %p974_p2 = scmp.lt.s32.totalorder %s972_s7, %s966_s25 }
  0x21   : > { %859 = vmatprep.mubr.msk.f32.mxu1 %vm277_vm1, %v267_v10  ;;  %873 = vmatprep.mubr.msk.f32.mxu0 %vm277_vm1, %v266_v11 }
  0x22   : > { %p975_p3 = por %p974_p2, %p973_p1 }
  0x24   : > { %860 = vmatmul.mubr.msk.f32.gmra.mrb[4].mxu1 %vm277_vm1, %v269_v12  ;;  %874 = vmatmul.mubr.msk.f32.gmra.mrb[4].mxu0 %vm277_vm1, %v268_v13  ;;  %p976_p4 = pnand %p975_p3, %p969_p0 }
  0x25   : > { %862 = vmatprep.mubr.msk.f32.mxu1 %vm277_vm1, %v271_v14  ;;  %876 = vmatprep.mubr.msk.f32.mxu0 %vm277_vm1, %v270_v15 }
  0x28   : > { %863 = vmatmul.mubr.msk.f32.gmra.mrb[6].mxu1 %vm277_vm1, %v273_v16  ;;  %877 = vmatmul.mubr.msk.f32.gmra.mrb[6].mxu0 %vm277_vm1, %v272_v17 }
  0x29   : > { %895 = vmatprep.mubr.msk.f32.mxu1 %vm568_vm2, %v566_v18 }
  0xef   : > { %v855_v19 = vpop.f32.mrb[0].mxu1  ;;  %v869_v20 = vpop.f32.mrb[0].mxu0 }
  0xf0   : > { %v510_v22 = vadd.f32 %v869_v20, %v855_v19  ;;  %v372_v23 = vpop.f32.mrb[1].mxu1  ;;  %v504_v24 = vpop.f32.mrb[1].mxu0 }
  0xf1   : > { %v505_v25 = vadd.f32 %v504_v24, %v372_v23 }
  0xf2   : > { %v551_v26 = vadd.f32 %v813_v21, %v510_v22 }
  0xf3   : > { %v550_v27 = vadd.f32 %v813_v21, %v505_v25  ;;  %v858_v28 = vpop.f32.mrb[2].mxu1  ;;  %v872_v29 = vpop.f32.mrb[2].mxu0 }
  0xf4   : > { %v559_v30 = vmax.f32 %v551_v26, 0.0  ;;  %v520_v31 = vadd.f32 %v872_v29, %v858_v28  ;;  %v382_v32 = vpop.f32.mrb[3].mxu1  ;;  %v514_v33 = vpop.f32.mrb[3].mxu0 }
  0xf5   : > { %v558_v34 = vmax.f32 %v550_v27, 0.0  ;;  %v515_v35 = vadd.f32 %v514_v33, %v382_v32 }
  0xf6   : > { %v553_v36 = vadd.f32 %v813_v21, %v520_v31 }
  0xf7   : > { %v552_v37 = vadd.f32 %v813_v21, %v515_v35  ;;  %v861_v38 = vpop.f32.mrb[4].mxu1  ;;  %v875_v39 = vpop.f32.mrb[4].mxu0  ;;  %v898_v40 = vpack.c.bf16 %v559_v30, %v558_v34 }
  0xf8   : > { %v561_v41 = vmax.f32 %v553_v36, 0.0  ;;  %v530_v42 = vadd.f32 %v875_v39, %v861_v38  ;;  %v392_v43 = vpop.f32.mrb[5].mxu1  ;;  %v524_v44 = vpop.f32.mrb[5].mxu0 }
  0xf9   : > { %v560_v45 = vmax.f32 %v552_v37, 0.0  ;;  %v525_v46 = vadd.f32 %v524_v44, %v392_v43  ;;  %899 = vmatprep.subr.bf16.mxu1 %v898_v40 }
  0xfa   : > { %v555_v47 = vadd.f32 %v813_v21, %v530_v42  ;;  %901 = vmatpush3.bf16.msra.mxu1 %v898_v40 }
  0xfb   : > { %v554_v48 = vadd.f32 %v813_v21, %v525_v46  ;;  %v864_v49 = vpop.f32.mrb[6].mxu1  ;;  %v878_v50 = vpop.f32.mrb[6].mxu0  ;;  %v902_v51 = vpack.c.bf16 %v561_v41, %v560_v45 }
  0xfc   : > { %v563_v52 = vmax.f32 %v555_v47, 0.0  ;;  %v540_v53 = vadd.f32 %v878_v50, %v864_v49  ;;  %v402_v54 = vpop.f32.mrb[7].mxu1  ;;  %v534_v55 = vpop.f32.mrb[7].mxu0 }
  0xfd   : > { %v562_v56 = vmax.f32 %v554_v48, 0.0  ;;  %v535_v57 = vadd.f32 %v534_v55, %v402_v54  ;;  %903 = vmatprep.subr.bf16.mxu1 %v902_v51 }
  0xfe   : > { %v557_v58 = vadd.f32 %v813_v21, %v540_v53  ;;  %905 = vmatpush3.bf16.msra.mxu1 %v902_v51 }
  0xff   : > { %v556_v59 = vadd.f32 %v813_v21, %v535_v57  ;;  %v906_v60 = vpack.c.bf16 %v563_v52, %v562_v56 }
 0x100   : > { %v565_v61 = vmax.f32 %v557_v58, 0.0 }
 0x101   : > { %v564_v62 = vmax.f32 %v556_v59, 0.0  ;;  %907 = vmatprep.subr.bf16.mxu1 %v906_v60 }
 0x102   : > { %909 = vmatpush3.bf16.msra.mxu1 %v906_v60 }
 0x103   : > { %v910_v63 = vpack.c.bf16 %v565_v61, %v564_v62 }
 0x105   : > { %911 = vmatprep.subr.bf16.mxu1 %v910_v63 }
 0x106   : > { %913 = vmatpush3.bf16.msra.mxu1 %v910_v63 }
 0x109   : > { %896 = vmatmul.mubr.msk.f32.vlgmr.msra.gmra.mrb[8].mxu1 %vm568_vm2, %v567_v0 }
 0x1dc   : > { %v897_v1 = vpop.f32.mrb[8].mxu1 }
 0x1dd   : > { %653 = vst.msk [vmem:[%s238_s8] sm:$0x1] %vm652_vm3, %v897_v1  ;;  %v641_v2 = vpop.f32.mrb[9].mxu1 }
 0x1de   : > { %651 = vst.msk [vmem:[%s245_s11] sm:$0xff] %vm650_vm4, %v641_v2 }
 0x1df   : > { %979 = shalt.err (!%p976_p4)
}
 0x1e0   : > { %s980_s8 = scalar_lea.hbm %s1192_s15, 16  ;;  %s984_s13 = scalar_lea.hbm %s1268_s4, 32 }
 0x1e1   : > { %p981_p7 = scmp.ne.s32.totalorder %s1192_s15, %s980_s8  ;;  %p985_p10 = scmp.lt.u32.totalorder %s1192_s15, %s1268_s4 }
 0x1e2   : > { %p986_p11 = scmp.lt.u32.totalorder %s984_s13, %s980_s8  ;;  %p988_p13 = scmp.lt.u32.totalorder %s980_s8, %s1192_s15 }
 0x1e3   : > { %p982_p8 = pnand %p981_p7, %p1132_p5 }
 0x1e4   : > { %p987_p12 = por %p986_p11, %p985_p10 }
 0x1e5   : > { %p983_p9 = pneg %p982_p8 }
 0x1e6   : > { %p989_p0 = por %p988_p13, %p987_p12 }
 0x1e8   : > { %p990_p1 = pnand %p989_p0, %p983_p9 }
 0x1ea   : > { %993 = shalt.err (!%p990_p1)
}
 0x1eb   : > { %922 = dma.vmem_to_hbm [thread:$0]  (%p1132_p5), %s1194_s9, 16, %s1192_s15, %s655_s23  }
 0x1ec   : > { %s659_s17 = scalar_lea.sflag [#allocation5], %s1183_s30  ;;  %s994_s25 = scalar_lea.vmem %s1201_s12, 128 }
 0x1ed   : > { %p995_p2 = scmp.ne.s32.totalorder %s1201_s12, %s994_s25  ;;  %s1063_s26 = smov [#allocation4]  }
 0x1ee   : > { %s998_s6 = sshll.u32 %s1063_s26, 4  ;;  %s999_s6 = int_to_ptr.vmem [resolvable:$false] %s998_s6 }
 0x1ef   : > { %p996_p3 = pnand %p995_p2, %p1132_p5  ;;  %s1000_s7 = scalar_lea.vmem %s999_s6, 256 }
 0x1f0   : > { %p1001_p7 = scmp.lt.s32.totalorder %s1201_s12, %s999_s6  ;;  %p1002_p8 = scmp.lt.s32.totalorder %s1000_s7, %s994_s25 }
 0x1f1   : > { %p997_p4 = pneg %p996_p3 }
 0x1f2   : > { %p1003_p9 = por %p1002_p8, %p1001_p7 }
 0x1f4   : > { %p1004_p10 = pnand %p1003_p9, %p997_p4 }
 0x1f6   : > { %1007 = shalt.err (!%p1004_p10)
}
 0x1f7   : > { %s1008_s30 = scalar_lea.hbm %s1199_s22, 128  ;;  %s1012_s23 = scalar_lea.hbm %s1269_s5, 256 }
 0x1f8   : > { %p1009_p11 = scmp.ne.s32.totalorder %s1199_s22, %s1008_s30  ;;  %p1013_p0 = scmp.lt.u32.totalorder %s1199_s22, %s1269_s5 }
 0x1f9   : > { %p1014_p1 = scmp.lt.u32.totalorder %s1012_s23, %s1008_s30  ;;  %p1016_p3 = scmp.lt.u32.totalorder %s1008_s30, %s1199_s22 }
 0x1fa   : > { %p1010_p12 = pnand %p1009_p11, %p1132_p5 }
 0x1fb   : > { %p1015_p2 = por %p1014_p1, %p1013_p0 }
 0x1fc   : > { %p1011_p13 = pneg %p1010_p12 }
 0x1fd   : > { %p1017_p4 = por %p1016_p3, %p1015_p2 }
 0x1ff   : > { %p1018_p7 = pnand %p1017_p4, %p1011_p13 }
 0x201   : > { %1021 = shalt.err (!%p1018_p7)
}
 0x202   : > { %923 = dma.vmem_to_hbm [thread:$0]  (%p1132_p5), %s1201_s12, 128, %s1199_s22, %s659_s17  }
 0x203 PF: > { %p933_p8 = scmp.ge.s32.totalorder %s1060_s21, 2  ;;  %s697_s11 = sand.u32 1, %s1048_s18  }
 0x204   : > { %s698_s13 = scalar_lea.sflag [#allocation3], %s697_s11 }
 0x205   : > { %p927_p9 = pnand %p933_p8, %p1136_p6 }
 0x207   : > { %1039 = dma.done.wait (!%p927_p9), %s698_s13, 16  }
 0x208   : > { %1041 = vsyncadd (!%p927_p9), %s698_s13, 4294967280  ;;  %s706_s14 = scalar_lea.sflag [#allocation5], %s697_s11 }
 0x209   : > { %1043 = dma.done.wait (!%p927_p9), %s706_s14, 128  }
 0x20a   : > { %1045 = vsyncadd (!%p927_p9), %s706_s14, 4294967168  ;;  %p19_p5 = scmp.ge.s32.totalorder %s1119_s24, 4   ;;  %s1272_s18 = smov %s1052_s19 }
 0x20b   : > { %s1273_s19 = smov %s1056_s20  ;;  %s1274_s20 = smov %s1130_s27 }
 0x20c   : > { %s1275_s21 = smov %s1119_s24  ;;  %21 = sbr.rel (!%p19_p5) target bundleno = 5 (0x5), region = 92 }
 0x213   :  { %711 = vsyncpa [#allocation3], 1 }
 0x214   :  { %713 = vsyncpa [#allocation3 + $0x1], 1 }
 0x215   :  { %714 = vsyncpa [#allocation5], 1 }
 0x216   :  { %716 = vsyncpa [#allocation5 + $0x1], 1 }

</bundles_post_ra>
